<compile_context>
chip_gen: v7x
topology: tpu7x:2x2x1
jax: 0.10.0
libtpu: 0.0.40
codegen_flags: <defaults>
</compile_context>

<pallas_src>
import functools
import math

import jax
import jax.numpy as jnp
from jax.experimental import pallas as pl
from jax.experimental.pallas import tpu as pltpu

_LANE = 128                            # TPU lane width
_PALLAS_MIN_BYTES = 1 << 20            # below ~1 MiB, pallas_call overhead dominates
_TARGET_TILE_BYTES = 4 * 1024 * 1024   # ~roofline knee; do NOT enlarge (v7x VMEM)
_VMEM_LIMIT_BYTES = 28 * 1024 * 1024   # explicit override; required on v5e/v6e defaults

_C0 = math.sqrt(2.0 / math.pi)         # sqrt(2/pi)
_C1 = _C0 * 0.044715                   # sqrt(2/pi) * 0.044715


def _chip_generation():
    """Best-effort TPU generation from device_kind; None if unknown."""
    try:
        kind = jax.devices()[0].device_kind.lower()
    except Exception:
        return None
    for tag, gen in (("v7", 7), ("7x", 7), ("v6", 6), ("v5", 5),
                     ("v4", 4), ("v3", 3), ("v2", 2)):
        if tag in kind:
            return gen
    return None


def _gelu_kernel(x_ref, o_ref, *, compute_dtype):
    # Polynomial + scaling in `compute_dtype` (bf16 on v6e/v7x for bf16 inputs,
    # f32 otherwise).  tanh argument is upcast to f32 so the EUP lowering is
    # safe on every chip generation.  inner = x*(c0 + c1*x^2) is algebraically
    # identical to sqrt(2/pi)*(x + 0.044715*x^3) and saves one VALU multiply.
    x = x_ref[...].astype(compute_dtype)
    inner = x * (_C0 + _C1 * (x * x))
    t = jnp.tanh(inner.astype(jnp.float32)).astype(compute_dtype)
    y = 0.5 * x * (1.0 + t)
    o_ref[...] = y.astype(o_ref.dtype)


def _gelu_reference(x: jax.Array) -> jax.Array:
    """Plain-JAX reference (same tanh-approx formula as the PyTorch module)."""
    x32 = x.astype(jnp.float32)
    y = 0.5 * x32 * (1.0 + jnp.tanh(
        jnp.sqrt(2.0 / jnp.pi) * (x32 + 0.044715 * jnp.power(x32, 3))))
    return y.astype(x.dtype)


def _choose_tiles(rows, cols, itemsize, target_tile_bytes, multi_tc):
    """Pick (tr, tc): largest layout-legal tile within the byte budget."""
    sublane = {4: 8, 2: 16, 1: 32}.get(itemsize, 8)

    # Column tile: full extent is always layout-legal (even for ragged D);
    # otherwise the largest 128-multiple that fits the budget at minimal rows.
    if cols % _LANE != 0:
        tc = cols
    else:
        max_cols = max(
            _LANE, ((target_tile_bytes // (sublane * itemsize)) // _LANE) * _LANE)
        tc = cols if cols <= max_cols else max_cols
    n_col_blocks = pl.cdiv(cols, tc)

    # Row tile: largest sublane multiple within the byte budget (or full extent).
    if rows <= sublane:
        tr = rows
    else:
        budget_rows = max(
            sublane, ((target_tile_bytes // (tc * itemsize)) // sublane) * sublane)
        tr = rows if budget_rows >= rows else budget_rows

    # Megacore: only on multi-TC parts (v7x), only when the whole op would
    # otherwise be a single grid step, and only when the split is perfectly
    # balanced — single-TC v5e/v6e skip the extra ~0.35 us grid step.
    if (multi_tc and n_col_blocks == 1 and tr == rows
            and rows % (2 * sublane) == 0):
        tr = rows // 2

    return tr, tc


def _as_lane_dense_2d(x: jax.Array) -> jax.Array:
    """Copy-free 2-D view of x that maximizes lane density of the stores."""
    n = x.size
    d = x.shape[-1] if x.ndim >= 1 else n
    rows = n // d

    if d % _LANE == 0:
        if d <= 4 * _LANE:
            # Fold whole rows into the lane dim: (R, D) -> (R/k, k*D).
            max_k = max(1, 4096 // d)
            for k in range(max_k, 0, -1):
                if rows % k == 0:
                    return x.reshape(rows // k, k * d)
        return x.reshape(rows, d)

    if n % _LANE == 0:
        # Ragged D but lane-divisible total: regroup the flat contiguous view
        # into a lane-dense slab (no pad, no copy, no slice afterwards).
        units = n // _LANE
        for m in range(min(32, units), 0, -1):
            if units % m == 0:
                return x.reshape(n // (m * _LANE), m * _LANE)

    # Fully ragged trailing dim: run it as-is with a full-extent last-dim
    # block; edge stores are masked but there are no extra HBM round trips.
    return x.reshape(rows, d)


def _gelu_pallas_2d(x2d, compute_dtype, multi_tc, target_tile_bytes):
    rows, cols = x2d.shape
    itemsize = jnp.dtype(x2d.dtype).itemsize
    tr, tc = _choose_tiles(rows, cols, itemsize, target_tile_bytes, multi_tc)
    grid = (pl.cdiv(rows, tr), pl.cdiv(cols, tc))

    return pl.pallas_call(
        functools.partial(_gelu_kernel, compute_dtype=compute_dtype),
        out_shape=jax.ShapeDtypeStruct((rows, cols), x2d.dtype),
        grid_spec=pltpu.PrefetchScalarGridSpec(
            num_scalar_prefetch=0,
            grid=grid,
            in_specs=[pl.BlockSpec((tr, tc), lambda i, j: (i, j))],
            out_specs=pl.BlockSpec((tr, tc), lambda i, j: (i, j)),
        ),
        compiler_params=pltpu.CompilerParams(
            dimension_semantics=("parallel", "parallel"),
            vmem_limit_bytes=_VMEM_LIMIT_BYTES,
        ),
    )(x2d)


def gelu(x: jax.Array, *, force_pallas: bool = False) -> jax.Array:
    """Tanh-approx GELU via a Pallas TPU kernel.  Accepts any shape (..., D)."""
    orig_shape = x.shape
    if x.size == 0:
        return x

    itemsize = jnp.dtype(x.dtype).itemsize
    if not force_pallas and x.size * itemsize < _PALLAS_MIN_BYTES:
        # Tiny tensors: pallas_call launch + DMA setup overhead dominates.
        return _gelu_reference(x)

    gen = _chip_generation()
    multi_tc = gen is not None and gen >= 7            # v7x: 2 TensorCores/chip
    if x.dtype == jnp.bfloat16 and gen is not None and gen >= 6:
        compute_dtype = jnp.bfloat16                   # bf16 VPU/EUP on v6e/v7x
    else:
        compute_dtype = jnp.float32                    # mandatory on v5e & older

    x2d = _as_lane_dense_2d(x)
    out2d = _gelu_pallas_2d(x2d, compute_dtype, multi_tc, _TARGET_TILE_BYTES)
    return out2d.reshape(orig_shape)


if __name__ == "__main__":
    # Matches the reference script: x = torch.rand(2, 3, 768)
    x = jax.random.uniform(jax.random.PRNGKey(0), (2, 3, 768), dtype=jnp.float32)
    y = jax.block_until_ready(gelu(x, force_pallas=True))
    assert y.shape == x.shape and y.dtype == x.dtype
    assert jnp.allclose(y, _gelu_reference(x), atol=1e-5, rtol=1e-5)

    # Ragged trailing dim (D % 128 != 0): direct masked-edge path, no pad/slice.
    x2 = jax.random.uniform(jax.random.PRNGKey(1), (4, 7, 100), dtype=jnp.float32)
    y2 = jax.block_until_ready(gelu(x2, force_pallas=True))
    assert y2.shape == x2.shape
    assert jnp.allclose(y2, _gelu_reference(x2), atol=1e-5, rtol=1e-5)

    # Small 128-multiple D: rows folded into the lane dim (free reshape).
    x3 = jax.random.uniform(jax.random.PRNGKey(2), (4, 8, 128), dtype=jnp.float32)
    y3 = jax.block_until_ready(gelu(x3, force_pallas=True))
    assert jnp.allclose(y3, _gelu_reference(x3), atol=1e-5, rtol=1e-5)

    # bf16 input: bf16 internals on v6e/v7x, f32 internals elsewhere.
    x4 = jax.random.uniform(jax.random.PRNGKey(3), (2, 8, 256), dtype=jnp.bfloat16)
    y4 = jax.block_until_ready(gelu(x4, force_pallas=True))
    assert y4.shape == x4.shape and y4.dtype == x4.dtype
    assert jnp.allclose(y4.astype(jnp.float32),
                        _gelu_reference(x4).astype(jnp.float32),
                        atol=0.05, rtol=0.05)

    print("KERNEL_OK")
</pallas_src>

<mosaic_0001>
module attributes {stable_mosaic.version = 11 : i64} {
  func.func @_gelu_kernel(%arg0: i32, %arg1: i32, %arg2: memref<6x768xf32, #tpu.memory_space<vmem>>, %arg3: memref<6x768xf32, #tpu.memory_space<vmem>>) attributes {dimension_semantics = [#tpu.dimension_semantics<parallel>, #tpu.dimension_semantics<parallel>], iteration_bounds = array<i64: 1, 1>, scalar_prefetch = 0 : i64, scratch_operands = 0 : i64, tpu.core_type = #tpu.core_type<tc>, window_params = [{transform_indices = @transform_0, window_bounds = array<i64: 6, 768>}, {transform_indices = @transform_1, window_bounds = array<i64: 6, 768>}]} {
    %c0 = arith.constant 0 : index
    %c0_0 = arith.constant 0 : index
    %0 = vector.load %arg2[%c0, %c0_0] : memref<6x768xf32, #tpu.memory_space<vmem>>, vector<6x768xf32>
    %1 = arith.mulf %0, %0 : vector<6x768xf32>
    %cst = arith.constant 0.0356774069 : f32
    %2 = vector.broadcast %cst : f32 to vector<6x768xf32>
    %3 = arith.mulf %2, %1 : vector<6x768xf32>
    %cst_1 = arith.constant 0.797884583 : f32
    %4 = vector.broadcast %cst_1 : f32 to vector<6x768xf32>
    %5 = arith.addf %4, %3 : vector<6x768xf32>
    %6 = arith.mulf %0, %5 : vector<6x768xf32>
    %7 = math.tanh %6 : vector<6x768xf32>
    %cst_2 = arith.constant 5.000000e-01 : f32
    %8 = vector.broadcast %cst_2 : f32 to vector<6x768xf32>
    %9 = arith.mulf %8, %0 : vector<6x768xf32>
    %cst_3 = arith.constant 1.000000e+00 : f32
    %10 = vector.broadcast %cst_3 : f32 to vector<6x768xf32>
    %11 = arith.addf %10, %7 : vector<6x768xf32>
    %12 = arith.mulf %9, %11 : vector<6x768xf32>
    %c0_4 = arith.constant 0 : index
    %c0_5 = arith.constant 0 : index
    %13 = vector.load %arg3[%c0_4, %c0_5] : memref<6x768xf32, #tpu.memory_space<vmem>>, vector<6x768xf32>
    tpu.vector_store %arg3[%c0_4, %c0_5], %12 {strides = array<i32>} : memref<6x768xf32, #tpu.memory_space<vmem>>, vector<6x768xf32>,
    return
  }
  func.func @transform_0(%arg0: i32, %arg1: i32) -> (i32, i32) {
    %c0_i32 = arith.constant 0 : i32
    return %arg0, %arg1 : i32, i32
  }
  func.func @transform_1(%arg0: i32, %arg1: i32) -> (i32, i32) {
    %c0_i32 = arith.constant 0 : i32
    return %arg0, %arg1 : i32, i32
  }
}

</mosaic_0001>

<bundles_post_ra>
// kernel: tpu_custom_call.1
= control target key start
LH: loop header
LB: loop body
LE: loop exit
PB: predicated region body
PF: predicated region fallthrough
CT: control target
= control target key end

     0   :  { %6 = vsyncpa [#allocation3], 0  ;;  %s194_s0 = inlined_call_operand.hbm [shape: f32[6,768], index: 0, kind: input, shape index: {}]   ;;  %s195_s1 = inlined_call_operand.hbm [shape: f32[6,768], index: 1, kind: output, shape index: {}]  }
   0x1   :  { %7 = vsyncpa [#allocation4], 0  ;;  %s158_s6 = smov [#allocation2]   ;;  %s110_s10 = scalar_lea.hbm %s194_s0, 768 }
   0x2   :  { %s14_s7 = sshll.u32 %s158_s6, 4  ;;  %p111_p0 = scmp.ne.s32.totalorder %s194_s0, %s110_s10  ;;  %s15_s7 = int_to_ptr.vmem [resolvable:$true] %s14_s7 }
   0x3   :  { %p114_p1 = scmp.lt.u32.totalorder %s110_s10, %s194_s0 }
   0x5   :  { %p116_p2 = pnand %p114_p1, %p111_p0 }
   0x7   :  { %119 = shalt.err (!%p116_p2)
}
   0x8   :  { %s120_s15 = scalar_lea.vmem %s15_s7, 768  ;;  %p125_p4 = scmp.lt.s32.totalorder %s15_s7, %s15_s7 }
   0x9   :  { %p121_p3 = scmp.ne.s32.totalorder %s15_s7, %s120_s15  ;;  %p126_p5 = scmp.lt.s32.totalorder %s120_s15, %s120_s15 }
   0xb   :  { %p127_p6 = por %p126_p5, %p125_p4 }
   0xd   :  { %p128_p7 = pnand %p127_p6, %p121_p3 }
   0xf   :  { %131 = shalt.err (!%p128_p7)
}
  0x10   :  { %17 = dma.hbm_to_vmem [thread:$0]  %s194_s0, 768, %s15_s7, [#allocation3]  }
  0x11   :  { %154 = dma.done.wait [#allocation3], 768  }
  0x12   :  { %155 = vsyncadd [#allocation3], 4294966528  ;;  %v21_v0 = vld [vmem:[#allocation2] sm:$0x3f]  ;;  %v22_v1 = vld [vmem:[#allocation2 + $0x8] sm:$0x3f] }
  0x13   :  { %v23_v2 = vld [vmem:[#allocation2 + $0x10] sm:$0x3f]  ;;  %v27_v3 = vmul.f32 %v21_v0, %v21_v0  ;;  %v28_v4 = vmul.f32 %v22_v1, %v22_v1  ;;  %v24_v5 = vld [vmem:[#allocation2 + $0x18] sm:$0x3f]  ;;  %v25_v6 = vld [vmem:[#allocation2 + $0x20] sm:$0x3f] }
  0x14   :  { %v29_v7 = vmul.f32 %v23_v2, %v23_v2  ;;  %v30_v8 = vmul.f32 %v24_v5, %v24_v5  ;;  %v26_v9 = vld [vmem:[#allocation2 + $0x28] sm:$0x3f]  ;;  %v31_v12 = vmul.f32 %v25_v6, %v25_v6  ;;  %v57_v30 = vmul.f32 0.5, %v21_v0  ;;  %s159_s0 = smov [#allocation5]  }
  0x15   :  { %v33_v10 = vmul.f32 0.035677407, %v27_v3  ;;  %v34_v11 = vmul.f32 0.035677407, %v28_v4  ;;  %v32_v15 = vmul.f32 %v26_v9, %v26_v9  ;;  %v58_v32 = vmul.f32 0.5, %v22_v1  ;;  %s87_s18 = sshll.u32 %s159_s0, 4  ;;  %s88_s18 = int_to_ptr.vmem [resolvable:$true] %s87_s18 }
  0x16   :  { %v35_v13 = vmul.f32 0.035677407, %v29_v7  ;;  %v36_v14 = vmul.f32 0.035677407, %v30_v8  ;;  %v37_v18 = vmul.f32 0.035677407, %v31_v12  ;;  %p137_p9 = scmp.lt.s32.totalorder %s88_s18, %s88_s18 }
  0x17   :  { %v39_v16 = vadd.f32 0.7978846, %v33_v10  ;;  %v40_v17 = vadd.f32 0.7978846, %v34_v11  ;;  %v38_v21 = vmul.f32 0.035677407, %v32_v15 }
  0x18   :  { %v41_v19 = vadd.f32 0.7978846, %v35_v13  ;;  %v42_v20 = vadd.f32 0.7978846, %v36_v14  ;;  %v43_v24 = vadd.f32 0.7978846, %v37_v18 }
  0x19   :  { %v45_v22 = vmul.f32 %v39_v16, %v21_v0  ;;  %v46_v23 = vmul.f32 %v40_v17, %v22_v1  ;;  %v44_v27 = vadd.f32 0.7978846, %v38_v21  ;;  %v59_v35 = vmul.f32 0.5, %v23_v2  ;;  %s132_s19 = scalar_lea.vmem %s88_s18, 768 }
  0x1a   :  { %v47_v25 = vmul.f32 %v41_v19, %v23_v2  ;;  %v48_v26 = vmul.f32 %v42_v20, %v24_v5  ;;  %v49_v28 = vmul.f32 %v43_v24, %v25_v6  ;;  %v60_v38 = vmul.f32 0.5, %v24_v5  ;;  %p133_p8 = scmp.ne.s32.totalorder %s88_s18, %s132_s19  ;;  %p138_p10 = scmp.lt.s32.totalorder %s132_s19, %s132_s19 }
  0x1b   :  { %98 = vtanh.f32 %v45_v22  ;;  %v50_v29 = vmul.f32 %v44_v27, %v26_v9  ;;  %v61_v42 = vmul.f32 0.5, %v25_v6  ;;  %v62_v46 = vmul.f32 0.5, %v26_v9 }
  0x1c   :  { %100 = vtanh.f32 %v46_v23  ;;  %p139_p11 = por %p138_p10, %p137_p9 }
  0x1d   :  { %102 = vtanh.f32 %v47_v25 }
  0x1e   :  { %104 = vtanh.f32 %v48_v26  ;;  %p140_p12 = pnand %p139_p11, %p133_p8 }
  0x1f   :  { %106 = vtanh.f32 %v49_v28 }
  0x20   :  { %108 = vtanh.f32 %v50_v29 }
  0x25   :  { %v99_v31 = vpop.eup %98 }
  0x26   :  { %v101_v33 = vpop.eup %100  ;;  %v63_v34 = vadd.f32 1.0, %v99_v31 }
  0x27   :  { %v103_v36 = vpop.eup %102  ;;  %v64_v37 = vadd.f32 1.0, %v101_v33 }
  0x28   :  { %v105_v39 = vpop.eup %104  ;;  %v69_v40 = vmul.f32 %v63_v34, %v57_v30  ;;  %v65_v41 = vadd.f32 1.0, %v103_v36 }
  0x29   :  { %v107_v43 = vpop.eup %106  ;;  %v70_v44 = vmul.f32 %v64_v37, %v58_v32  ;;  %v66_v45 = vadd.f32 1.0, %v105_v39 }
  0x2a   :  { %v109_v47 = vpop.eup %108  ;;  %75 = vst [vmem:[#allocation5] sm:$0x3f] %v69_v40  ;;  %v71_v48 = vmul.f32 %v65_v41, %v59_v35  ;;  %v67_v49 = vadd.f32 1.0, %v107_v43 }
  0x2b   :  { %76 = vst [vmem:[#allocation5 + $0x8] sm:$0x3f] %v70_v44  ;;  %v72_v50 = vmul.f32 %v66_v45, %v60_v38  ;;  %v68_v51 = vadd.f32 1.0, %v109_v47 }
  0x2c   :  { %77 = vst [vmem:[#allocation5 + $0x10] sm:$0x3f] %v71_v48  ;;  %v73_v52 = vmul.f32 %v67_v49, %v61_v42 }
  0x2d   :  { %78 = vst [vmem:[#allocation5 + $0x18] sm:$0x3f] %v72_v50  ;;  %v74_v53 = vmul.f32 %v68_v51, %v62_v46 }
  0x2e   :  { %79 = vst [vmem:[#allocation5 + $0x20] sm:$0x3f] %v73_v52 }
  0x2f   :  { %80 = vst [vmem:[#allocation5 + $0x28] sm:$0x3f] %v74_v53 }
  0x30   :  { %143 = shalt.err (!%p140_p12)
}
  0x31   :  { %s144_s22 = scalar_lea.hbm %s195_s1, 768 }
  0x32   :  { %p145_p13 = scmp.ne.s32.totalorder %s195_s1, %s144_s22  ;;  %p148_p0 = scmp.lt.u32.totalorder %s144_s22, %s195_s1 }
  0x34   :  { %p150_p1 = pnand %p148_p0, %p145_p13 }
  0x36   :  { %153 = shalt.err (!%p150_p1)
}
  0x37   :  { %90 = dma.vmem_to_hbm [thread:$0]  %s88_s18, 768, %s195_s1, [#allocation4]  }
  0x38   :  { %156 = dma.done.wait [#allocation4], 768  }
  0x39   :  { %157 = vsyncadd [#allocation4], 4294966528 }
  0x3a   :  { %94 = vsyncpa [#allocation3], 1 }
  0x3b   :  { %95 = vsyncpa [#allocation4], 1 }

</bundles_post_ra>
